<compile_context>
chip_gen: v7x
topology: tpu7x:2x2x1
jax: 0.10.0
libtpu: 0.0.40
codegen_flags: <defaults>
</compile_context>

<pallas_src>
import math

import jax
import jax.numpy as jnp
from jax import lax
from jax.experimental import pallas as pl
from jax.experimental.pallas import tpu as pltpu


_TEMP_BUDGET = 2 * 1024 * 1024      # per-chunk register/VMEM temporary target
_MAX_CHUNKS = 32                    # bound on the static per-block chunk loop


def _round_up(x, m):
    return ((x + m - 1) // m) * m


def _tile_bytes(sublanes, lanes, itemsize):
    """Padded VMEM footprint of one (sublanes, lanes) slab."""
    return _round_up(max(sublanes, 1), 8) * _round_up(max(lanes, 1), 128) * itemsize


def _divisors_desc(n):
    return [d for d in range(n, 0, -1) if n % d == 0]


def _vmem_limits():
    """Generation-dependent VMEM limit / block budget (v5e/v6e: 128 MiB, v7x: 64 MiB)."""
    try:
        cap = int(getattr(pltpu.get_tpu_info(), "vmem_capacity_bytes",
                          64 * 1024 * 1024))
    except Exception:
        cap = 64 * 1024 * 1024
    limit = max(32 * 1024 * 1024, min(cap // 2, 96 * 1024 * 1024))
    budget = (limit * 3) // 4       # headroom for Mosaic internals / pipelining
    return limit, budget


def _select_tiling(N, C, H, W, HO, WO, halo, in_b, acc_b, budget):
    """Pick (TC, TCC) channel tiles honestly accounting for all VMEM users."""
    pad_h = _round_up(halo, 8) if halo > 0 else 0   # 8-aligned -> aligned body stores
    pad_w = _round_up(halo, 8) if halo > 0 else 0
    HPpad = pad_h + H + halo
    WPpad = pad_w + W + halo

    per_chan_tmp = (_tile_bytes(HO, W, max(in_b, acc_b))    # row accumulator
                    + _tile_bytes(W, HO, acc_b)             # transposed row acc
                    + _tile_bytes(WO, HO, acc_b)            # column accumulator
                    + _tile_bytes(HO, WO, in_b))            # transposed out chunk

    def pick_tcc(tc):
        cap = max(1, _TEMP_BUDGET // max(per_chan_tmp, 1))
        divs_desc = _divisors_desc(tc)
        tcc = next((d for d in divs_desc if d <= cap), 1)
        if tc // tcc > _MAX_CHUNKS:                 # bound the static chunk loop
            tcc = next(d for d in reversed(divs_desc) if tc // d <= _MAX_CHUNKS)
        return tcc

    def estimate(tc, tcc):
        blocks = (2 * tc * _tile_bytes(H, W, in_b)          # double-buffered input
                  + 2 * tc * _tile_bytes(HO, WO, in_b))     # double-buffered output
        scratch = (tcc * _tile_bytes(HPpad, W, in_b)        # H-padded stage
                   + tcc * _tile_bytes(WPpad, HO, acc_b))   # transposed row reduction
        return blocks + scratch + tcc * per_chan_tmp

    chosen = None
    for tc in _divisors_desc(C):
        tcc = pick_tcc(tc)
        if estimate(tc, tcc) <= budget:
            chosen = (tc, tcc)
            break
    if chosen is None:
        return None
    tc, tcc = chosen

    # Feed the v7x megacore (2 TCs sharding the "parallel" grid axes) with at
    # least 4 grid steps when the channel count allows it; harmless on v5e/v6e.
    if N * (C // tc) < 4:
        for d in _divisors_desc(C):
            if d < tc and N * (C // d) >= 4:
                tc, tcc = d, pick_tcc(d)
                break

    return tc, tcc, pad_h, pad_w, HPpad, WPpad


def _make_pool_kernel(*, K, S, halo, H, W, HO, WO, TCC, n_chunks, op,
                      in_dtype, acc_dtype, inv_div, pad_h, pad_w):
    """Pooling kernel for one (batch, channel-tile) NCHW block.

    Refs:
      x_ref    : (1, TC, H, W)        un-padded input block
      o_ref    : (1, TC, HO, WO)      pooled output block
      xp_ref   : (TCC, pad_h+H+halo, W)    H-zero-padded staging scratch
      rowt_ref : (TCC, pad_w+W+halo, HO)   W-zero-padded, transposed row reduction
    """
    if op == "MaxPool2d":
        combine = jnp.maximum
    else:
        def combine(a, b):
            return a + b

    def sds(start, size):               # sublane (dim-1) slice, strided iff S > 1
        return pl.ds(start, size) if S == 1 else pl.ds(start, size, S)

    def kernel(x_ref, o_ref, xp_ref, rowt_ref):
        # Physically zero the halo rows of the padded scratches (never touched
        # by the body stores).  Done every grid step so each TensorCore's
        # scratch is initialised regardless of which grid slice it runs.
        if halo > 0:
            zh = jnp.zeros((TCC, halo, W), in_dtype)
            xp_ref[:, pad_h - halo:pad_h, :] = zh
            xp_ref[:, pad_h + H:pad_h + H + halo, :] = zh
            zw = jnp.zeros((TCC, halo, HO), acc_dtype)
            rowt_ref[:, pad_w - halo:pad_w, :] = zw
            rowt_ref[:, pad_w + W:pad_w + W + halo, :] = zw

        for c in range(n_chunks):                       # static, bounded chunk loop
            c0 = c * TCC
            # Stage the chunk with its H zero-halo in VMEM.  pad_h is a multiple
            # of 8, so this bulk store is sublane-aligned.
            xp_ref[:, pad_h:pad_h + H, :] = x_ref[0, c0:c0 + TCC, :, :]

            # ---- H (row) reduction: K bulk strided sublane reads ------------
            def row_slice(ki):
                v = xp_ref[:, sds(pad_h - halo + ki, HO), :]        # (TCC, HO, W)
                return v.astype(acc_dtype) if op == "AvgPool2d" else v

            racc = row_slice(0)
            for ki in range(1, K):
                racc = combine(racc, row_slice(ki))

            # Swap W <-> HO (batched minor-dims XLU transpose) so the W
            # reduction becomes strided *sublane* reads; body stored at the
            # 8-aligned offset pad_w, the W zero-halo is already in place.
            rowt_ref[:, pad_w:pad_w + W, :] = jnp.swapaxes(racc, 1, 2).astype(acc_dtype)

            # ---- W (column) reduction ---------------------------------------
            cacc = rowt_ref[:, sds(pad_w - halo, WO), :]            # (TCC, WO, HO)
            for kj in range(1, K):
                cacc = combine(cacc, rowt_ref[:, sds(pad_w - halo + kj, WO), :])
            if op == "AvgPool2d":
                cacc = cacc * inv_div

            # Swap back to (TCC, HO, WO) and store the NCHW output chunk.
            o_ref[0, c0:c0 + TCC, :, :] = jnp.swapaxes(cacc, 1, 2).astype(o_ref.dtype)

    return kernel


def _reduce_window_pool(x_nchw, K, S, halo, op, divisor_override=None):
    """Pure-JAX reference / fallback: ZeroPad2d(halo) then pool with padding=0."""
    xp = jnp.pad(x_nchw, ((0, 0), (0, 0), (halo, halo), (halo, halo)))
    if op == "MaxPool2d":
        return lax.reduce_window(xp, -jnp.inf, lax.max,
                                 (1, 1, K, K), (1, 1, S, S), "VALID")
    div = divisor_override if divisor_override is not None else K * K
    s = lax.reduce_window(xp, 0.0, lax.add, (1, 1, K, K), (1, 1, S, S), "VALID")
    return (s / div).astype(x_nchw.dtype)


def pallas_pool_nchw(x, K, S, halo, op, divisor_override=None):
    """x: (N, C, H, W) un-padded NCHW input.  Returns (N, C, HO, WO) in x.dtype."""
    N, C, H, W = x.shape
    HP, WP = H + 2 * halo, W + 2 * halo
    HO = (HP - K) // S + 1
    WO = (WP - K) // S + 1
    assert HO >= 1 and WO >= 1, "pooling window larger than padded input"

    if op == "AvgPool2d":
        acc_dtype = jnp.float32
        div = divisor_override if divisor_override is not None else K * K
        inv_div = 1.0 / float(div)
    else:
        # Max is exact in the input dtype (halves scratch bytes for bf16).
        # TODO(synk): on v5e (no bf16 VALU) a f32 max accumulator may pack better.
        acc_dtype = x.dtype
        inv_div = None

    in_b = jnp.dtype(x.dtype).itemsize
    acc_b = jnp.dtype(acc_dtype).itemsize
    vmem_limit, budget = _vmem_limits()
    sel = _select_tiling(N, C, H, W, HO, WO, halo, in_b, acc_b, budget)
    if sel is None:
        # TODO(synk): overlapping H-tiling (Element-offset BlockSpec) for images so
        # large that even a single-channel block overflows VMEM; use XLA meanwhile.
        return _reduce_window_pool(x, K, S, halo, op, divisor_override)
    TC, TCC, pad_h, pad_w, HPpad, WPpad = sel

    kernel = _make_pool_kernel(
        K=K, S=S, halo=halo, H=H, W=W, HO=HO, WO=WO, TCC=TCC, n_chunks=TC // TCC,
        op=op, in_dtype=x.dtype, acc_dtype=acc_dtype, inv_div=inv_div,
        pad_h=pad_h, pad_w=pad_w)

    return pl.pallas_call(
        kernel,
        out_shape=jax.ShapeDtypeStruct((N, C, HO, WO), x.dtype),
        grid_spec=pltpu.PrefetchScalarGridSpec(
            num_scalar_prefetch=0,
            grid=(N, C // TC),
            in_specs=[pl.BlockSpec((1, TC, H, W), lambda n, c: (n, c, 0, 0))],
            out_specs=pl.BlockSpec((1, TC, HO, WO), lambda n, c: (n, c, 0, 0)),
            scratch_shapes=[
                pltpu.VMEM((TCC, HPpad, W), x.dtype),      # H-padded input stage
                pltpu.VMEM((TCC, WPpad, HO), acc_dtype),   # transposed row reduction
            ],
        ),
        compiler_params=pltpu.CompilerParams(
            dimension_semantics=("parallel", "parallel"),
            vmem_limit_bytes=vmem_limit,
        ),
    )(x)


class Pool:
    """JAX/Pallas port of torchgems.spatial.Pool (num_spatial_parts == 1).

    With a single spatial part the halo_exchange_layer has no neighbours, so its
    forward reduces exactly to ZeroPad2d(halo_len); the kernel applies that zero
    halo in VMEM and pools with padding=0, matching the PyTorch module (MaxPool
    therefore includes the halo *zeros* in the max, unlike MaxPool2d(padding=h)).
    """

    def __init__(self, local_rank, spatial_size, num_spatial_parts, kernel_size,
                 stride, padding, slice_method="square", dilation=1,
                 return_indices=False, count_include_pad=True,
                 divisor_override=None, ceil_mode=False, operation=None):
        assert dilation == 1, "dilation > 1, Not Supported"
        assert return_indices is False, "return_indices == True, not supported"
        assert ceil_mode is False, "ceil mode == True, not supported"
        assert operation in ("MaxPool2d", "AvgPool2d"), \
            "Only MaxPool2d and AvgPool2d are supported"
        if isinstance(kernel_size, int):
            kernel_size = (kernel_size, kernel_size)
        if isinstance(stride, int):
            stride = (stride, stride)
        if isinstance(padding, int):
            padding = (padding, padding)
        halo_len = math.floor((kernel_size[0] - 1) / 2)
        assert kernel_size[0] == kernel_size[1], "Kernel Size should be same in pooling"
        assert stride[0] == stride[1], "Stride should be same in pooling"
        assert padding[0] == padding[1], "Padding should be same in pooling"
        assert halo_len == padding[0], "halo_len should be equal to padding in pool layers"
        assert num_spatial_parts == 1, "single-spatial-part simulation only"
        # TODO(synk): multi-part halo exchange (torch.distributed isend/irecv) would map
        # to pltpu.make_async_remote_copy between TPU devices; not implemented (no peers).
        self.halo_len = halo_len
        self.K = kernel_size[0]
        self.S = stride[0]
        self.op = operation
        self.divisor_override = divisor_override
        # count_include_pad only affects AvgPool2d's own padding, which is 0 in the
        # original module (padding comes from ZeroPad2d), so it is a no-op here too.

    def __call__(self, x_nchw):
        # NCHW in, NCHW out — no wrapper-side transposes or padding.
        return pallas_pool_nchw(x_nchw, self.K, self.S, self.halo_len, self.op,
                                self.divisor_override)


if __name__ == "__main__":
    key = jax.random.PRNGKey(0)
    N, C, H, W = 2, 4, 16, 16
    x = jax.random.normal(key, (N, C, H, W), dtype=jnp.float32)

    # MaxPool2d(kernel=3, stride=2, padding=1)   (halo_len = 1 = padding)
    max_pool = Pool(local_rank=0, spatial_size=1, num_spatial_parts=1,
                    kernel_size=3, stride=2, padding=1, operation="MaxPool2d")
    y_max = jax.block_until_ready(max_pool(x))
    ref_max = _reduce_window_pool(x, 3, 2, 1, "MaxPool2d")
    assert y_max.shape == (N, C, 8, 8), y_max.shape
    assert jnp.allclose(y_max, ref_max, rtol=1e-5, atol=1e-5), "MaxPool2d mismatch"

    # AvgPool2d(kernel=3, stride=2, padding=1)
    avg_pool = Pool(local_rank=0, spatial_size=1, num_spatial_parts=1,
                    kernel_size=3, stride=2, padding=1, operation="AvgPool2d")
    y_avg = jax.block_until_ready(avg_pool(x))
    ref_avg = _reduce_window_pool(x, 3, 2, 1, "AvgPool2d")
    assert y_avg.shape == (N, C, 8, 8), y_avg.shape
    assert jnp.allclose(y_avg, ref_avg, rtol=1e-5, atol=1e-5), "AvgPool2d mismatch"

    # MaxPool2d(kernel=3, stride=1, padding=1) — exercises the S == 1 path.
    max_pool_s1 = Pool(local_rank=0, spatial_size=1, num_spatial_parts=1,
                       kernel_size=3, stride=1, padding=1, operation="MaxPool2d")
    y_s1 = jax.block_until_ready(max_pool_s1(x))
    ref_s1 = _reduce_window_pool(x, 3, 1, 1, "MaxPool2d")
    assert y_s1.shape == (N, C, 16, 16), y_s1.shape
    assert jnp.allclose(y_s1, ref_s1, rtol=1e-5, atol=1e-5), "MaxPool2d s=1 mismatch"

    # MaxPool2d(kernel=2, stride=2, padding=0) — exercises the halo == 0 path.
    max_pool_h0 = Pool(local_rank=0, spatial_size=1, num_spatial_parts=1,
                       kernel_size=2, stride=2, padding=0, operation="MaxPool2d")
    y_h0 = jax.block_until_ready(max_pool_h0(x))
    ref_h0 = _reduce_window_pool(x, 2, 2, 0, "MaxPool2d")
    assert y_h0.shape == (N, C, 8, 8), y_h0.shape
    assert jnp.allclose(y_h0, ref_h0, rtol=1e-5, atol=1e-5), "MaxPool2d halo=0 mismatch"

    print("KERNEL_OK")
</pallas_src>

<mosaic_0001>
module attributes {stable_mosaic.version = 11 : i64} {
  func.func @kernel(%arg0: i32, %arg1: i32, %arg2: memref<1x2x16x16xf32, #tpu.memory_space<vmem>>, %arg3: memref<1x2x8x8xf32, #tpu.memory_space<vmem>>, %arg4: memref<2x25x16xf32, #tpu.memory_space<vmem>>, %arg5: memref<2x25x8xf32, #tpu.memory_space<vmem>>) attributes {dimension_semantics = [#tpu.dimension_semantics<parallel>, #tpu.dimension_semantics<parallel>], iteration_bounds = array<i64: 2, 2>, scalar_prefetch = 0 : i64, scratch_operands = 2 : i64, tpu.core_type = #tpu.core_type<tc>, window_params = [{transform_indices = @transform_0, window_bounds = array<i64: 1, 2, 16, 16>}, {transform_indices = @transform_1, window_bounds = array<i64: 1, 2, 8, 8>}]} {
    %cst = arith.constant 0.000000e+00 : f32
    %0 = vector.broadcast %cst : f32 to vector<2x1x16xf32>
    %c0 = arith.constant 0 : index
    %c7 = arith.constant 7 : index
    %c0_0 = arith.constant 0 : index
    %1 = vector.load %arg4[%c0, %c7, %c0_0] : memref<2x25x16xf32, #tpu.memory_space<vmem>>, vector<2x1x16xf32>
    tpu.vector_store %arg4[%c0, %c7, %c0_0], %0 {strides = array<i32>} : memref<2x25x16xf32, #tpu.memory_space<vmem>>, vector<2x1x16xf32>,
    %c0_1 = arith.constant 0 : index
    %c24 = arith.constant 24 : index
    %c0_2 = arith.constant 0 : index
    %2 = vector.load %arg4[%c0_1, %c24, %c0_2] : memref<2x25x16xf32, #tpu.memory_space<vmem>>, vector<2x1x16xf32>
    tpu.vector_store %arg4[%c0_1, %c24, %c0_2], %0 {strides = array<i32>} : memref<2x25x16xf32, #tpu.memory_space<vmem>>, vector<2x1x16xf32>,
    %cst_3 = arith.constant 0.000000e+00 : f32
    %3 = vector.broadcast %cst_3 : f32 to vector<2x1x8xf32>
    %c0_4 = arith.constant 0 : index
    %c7_5 = arith.constant 7 : index
    %c0_6 = arith.constant 0 : index
    %4 = vector.load %arg5[%c0_4, %c7_5, %c0_6] : memref<2x25x8xf32, #tpu.memory_space<vmem>>, vector<2x1x8xf32>
    tpu.vector_store %arg5[%c0_4, %c7_5, %c0_6], %3 {strides = array<i32>} : memref<2x25x8xf32, #tpu.memory_space<vmem>>, vector<2x1x8xf32>,
    %c0_7 = arith.constant 0 : index
    %c24_8 = arith.constant 24 : index
    %c0_9 = arith.constant 0 : index
    %5 = vector.load %arg5[%c0_7, %c24_8, %c0_9] : memref<2x25x8xf32, #tpu.memory_space<vmem>>, vector<2x1x8xf32>
    tpu.vector_store %arg5[%c0_7, %c24_8, %c0_9], %3 {strides = array<i32>} : memref<2x25x8xf32, #tpu.memory_space<vmem>>, vector<2x1x8xf32>,
    %c0_10 = arith.constant 0 : index
    %c0_11 = arith.constant 0 : index
    %c0_12 = arith.constant 0 : index
    %c0_13 = arith.constant 0 : index
    %6 = vector.load %arg2[%c0_10, %c0_11, %c0_12, %c0_13] : memref<1x2x16x16xf32, #tpu.memory_space<vmem>>, vector<1x2x16x16xf32>
    %7 = vector.shape_cast %6 : vector<1x2x16x16xf32> to vector<2x16x16xf32>
    %c0_14 = arith.constant 0 : index
    %c8 = arith.constant 8 : index
    %c0_15 = arith.constant 0 : index
    %8 = vector.load %arg4[%c0_14, %c8, %c0_15] : memref<2x25x16xf32, #tpu.memory_space<vmem>>, vector<2x16x16xf32>
    tpu.vector_store %arg4[%c0_14, %c8, %c0_15], %7 {strides = array<i32>} : memref<2x25x16xf32, #tpu.memory_space<vmem>>, vector<2x16x16xf32>,
    %c0_16 = arith.constant 0 : index
    %c7_17 = arith.constant 7 : index
    %c0_18 = arith.constant 0 : index
    %9 = tpu.strided_load %arg4[%c0_16, %c7_17, %c0_18] {strides = array<i32: 1, 2, 1>} : memref<2x25x16xf32, #tpu.memory_space<vmem>>, vector<2x8x16xf32>
    %c0_19 = arith.constant 0 : index
    %c8_20 = arith.constant 8 : index
    %c0_21 = arith.constant 0 : index
    %10 = tpu.strided_load %arg4[%c0_19, %c8_20, %c0_21] {strides = array<i32: 1, 2, 1>} : memref<2x25x16xf32, #tpu.memory_space<vmem>>, vector<2x8x16xf32>
    %11 = arith.maximumf %9, %10 : vector<2x8x16xf32>
    %c0_22 = arith.constant 0 : index
    %c9 = arith.constant 9 : index
    %c0_23 = arith.constant 0 : index
    %12 = tpu.strided_load %arg4[%c0_22, %c9, %c0_23] {strides = array<i32: 1, 2, 1>} : memref<2x25x16xf32, #tpu.memory_space<vmem>>, vector<2x8x16xf32>
    %13 = arith.maximumf %11, %12 : vector<2x8x16xf32>
    %14 = tpu.transpose %13, [0, 2, 1] : vector<2x8x16xf32> -> vector<2x16x8xf32>
    %c0_24 = arith.constant 0 : index
    %c8_25 = arith.constant 8 : index
    %c0_26 = arith.constant 0 : index
    %15 = vector.load %arg5[%c0_24, %c8_25, %c0_26] : memref<2x25x8xf32, #tpu.memory_space<vmem>>, vector<2x16x8xf32>
    tpu.vector_store %arg5[%c0_24, %c8_25, %c0_26], %14 {strides = array<i32>} : memref<2x25x8xf32, #tpu.memory_space<vmem>>, vector<2x16x8xf32>,
    %c0_27 = arith.constant 0 : index
    %c7_28 = arith.constant 7 : index
    %c0_29 = arith.constant 0 : index
    %16 = tpu.strided_load %arg5[%c0_27, %c7_28, %c0_29] {strides = array<i32: 1, 2, 1>} : memref<2x25x8xf32, #tpu.memory_space<vmem>>, vector<2x8x8xf32>
    %c0_30 = arith.constant 0 : index
    %c8_31 = arith.constant 8 : index
    %c0_32 = arith.constant 0 : index
    %17 = tpu.strided_load %arg5[%c0_30, %c8_31, %c0_32] {strides = array<i32: 1, 2, 1>} : memref<2x25x8xf32, #tpu.memory_space<vmem>>, vector<2x8x8xf32>
    %18 = arith.maximumf %16, %17 : vector<2x8x8xf32>
    %c0_33 = arith.constant 0 : index
    %c9_34 = arith.constant 9 : index
    %c0_35 = arith.constant 0 : index
    %19 = tpu.strided_load %arg5[%c0_33, %c9_34, %c0_35] {strides = array<i32: 1, 2, 1>} : memref<2x25x8xf32, #tpu.memory_space<vmem>>, vector<2x8x8xf32>
    %20 = arith.maximumf %18, %19 : vector<2x8x8xf32>
    %21 = tpu.transpose %20, [0, 2, 1] : vector<2x8x8xf32> -> vector<2x8x8xf32>
    %c0_36 = arith.constant 0 : index
    %c0_37 = arith.constant 0 : index
    %c0_38 = arith.constant 0 : index
    %c0_39 = arith.constant 0 : index
    %22 = vector.load %arg3[%c0_36, %c0_37, %c0_38, %c0_39] : memref<1x2x8x8xf32, #tpu.memory_space<vmem>>, vector<1x2x8x8xf32>
    %23 = vector.shape_cast %22 : vector<1x2x8x8xf32> to vector<2x8x8xf32>
    %24 = vector.shape_cast %21 : vector<2x8x8xf32> to vector<1x2x8x8xf32>
    tpu.vector_store %arg3[%c0_36, %c0_37, %c0_38, %c0_39], %24 {strides = array<i32>} : memref<1x2x8x8xf32, #tpu.memory_space<vmem>>, vector<1x2x8x8xf32>,
    return
  }
  func.func @transform_0(%arg0: i32, %arg1: i32) -> (i32, i32, i32, i32) {
    %c0_i32 = arith.constant 0 : i32
    %c0_i32_0 = arith.constant 0 : i32
    %c0_i32_1 = arith.constant 0 : i32
    return %arg0, %arg1, %c0_i32, %c0_i32_0 : i32, i32, i32, i32
  }
  func.func @transform_1(%arg0: i32, %arg1: i32) -> (i32, i32, i32, i32) {
    %c0_i32 = arith.constant 0 : i32
    %c0_i32_0 = arith.constant 0 : i32
    %c0_i32_1 = arith.constant 0 : i32
    return %arg0, %arg1, %c0_i32, %c0_i32_0 : i32, i32, i32, i32
  }
}

</mosaic_0001>

<bundles_post_ra>
// kernel: tpu_custom_call.1
= control target key start
LH: loop header
LB: loop body
LE: loop exit
PB: predicated region body
PF: predicated region fallthrough
CT: control target
= control target key end

     0   :  { %6 = vsyncpa [#allocation5], 0  ;;  %s899_s0 = inlined_call_operand.hbm [shape: f32[2,4,16,16], index: 0, kind: input, shape index: {}]   ;;  %s900_s1 = inlined_call_operand.hbm [shape: f32[2,4,8,8], index: 1, kind: output, shape index: {}]  }
   0x1   :  { %8 = vsyncpa [#allocation5 + $0x1], 0 }
   0x2   :  { %9 = vsyncpa [#allocation6], 0 }
   0x3   :  { %11 = vsyncpa [#allocation6 + $0x1], 0  ;;  %s697_s6 = smov 0   ;;  %s699_s7 = smov 0  }
   0x4   :  { %s701_s8 = smov 0   ;;  %s703_s9 = smov 0  }
   0x5   :  { %s705_s10 = smov 0   ;;  %s707_s11 = smov 0  }
   0x6   :  { %s709_s12 = smov 0   ;;  %s711_s13 = smov 0  }
   0x7 LB: > { %s448_s14 = sadd.s32 4294967295, %s678_s13   ;;  %s449_s15 = sadd.s32 4294967294, %s678_s13   ;;  %s678_s13 = sphi %s711_s13, %s17_s13   ;;  %s674_s12 = sphi %s709_s12, %s915_s12   ;;  %s670_s11 = sphi %s707_s11, %s914_s11   ;;  %s666_s10 = sphi %s705_s10, %s913_s10   ;;  %s662_s9 = sphi %s703_s9, %s912_s9   ;;  %s658_s8 = sphi %s701_s8, %s911_s8   ;;  %s654_s7 = sphi %s699_s7, %s910_s7   ;;  %s650_s6 = sphi %s697_s6, %s909_s6  }
   0x8   : > { %s26_s16 = sadd.s32 1, %s670_s11  ;;  %s29_s17 = sadd.s32 1, %s674_s12 }
   0x9   : > { %p27_p0 = scmp.ge.s32.totalorder %s26_s16, 2  ;;  %s38_s18 = sadd.s32 1, %s658_s8 }
   0xa   : > { %p45_p1 = scmp.ne.s32.totalorder %s658_s8, %s654_s7  ;;  %p46_p2 = scmp.eq.s32.totalorder %s678_s13, 0 }
   0xb   : > { %s917_s16 = smov (%p27_p0, %s26_s16), 0  ;;  %s919_s17 = smov (!%p27_p0, %s29_s17), %s674_s12 }
   0xc   : > { %s34_s19 = ssub.s32 %s670_s11, %s917_s16  ;;  %p750_p3 = por %p46_p2, %p45_p1 }
   0xd   : > { %p31_p4 = scmp.ge.s32.totalorder %s919_s17, 2  ;;  %p51_p5 = scmp.ne.s32.totalorder %s654_s7, %s650_s6 }
   0xe   : > { %p52_p6 = scmp.eq.s32.totalorder %s448_s14, 0  ;;  %p77_p7 = scmp.eq.s32.totalorder %s448_s14, 3 }
   0xf   : > { %s921_s17 = smov (%p31_p4, %s919_s17), 0  ;;  %p83_p10 = scmp.eq.s32.totalorder %s449_s15, 3 }
  0x10   : > { %p758_p8 = por %p52_p6, %p51_p5  ;;  %p762_p9 = por %p77_p7, %p45_p1 }
  0x11   : > { %s33_s23 = ssub.s32 %s674_s12, %s921_s17  ;;  %p768_p12 = por %p83_p10, %p51_p5 }
  0x12   : > { %s904_s22 = scalar_select %p762_p9, 1, 0 }
  0x13   : > { %s35_s24 = sor.u32 %s34_s19, %s33_s23  ;;  %p479_p13 = scmp.lt.s32.totalorder %s678_s13, 4 }
  0x14   : > { %p36_p11 = scmp.eq.s32.totalorder %s35_s24, 0  ;;  %s103_s26 = sand.u32 1, %s658_s8  }
  0x15   : > { %s905_s25 = scalar_select %p768_p12, 1, 0 }
  0x16   : > { %s775_s27 = scalar_select %p36_p11, %s658_s8, %s38_s18  }
  0x17   : > { %s452_s28 = sshll.u32 %s103_s26, 5  ;;  %s466_s29 = sshll.u32 %s670_s11, 2 }
  0x18   : > { %s455_s30 = sshll.u32 %s674_s12, 3  ;;  %s107_s2 = scalar_lea.vmem [#allocation4], %s452_s28 }
  0x19   : > { %s117_s3 = sshll.u32 %s107_s2, 4  ;;  %s114_s4 = sadd.s32 %s466_s29, %s455_s30  ;;  %s779_s3 = int_to_ptr.vmem [resolvable:$true] %s117_s3 }
  0x1a   : > { %s456_s5 = sshll.u32 %s114_s4, 7  ;;  %p783_p0 = pnand %p479_p13, %p750_p3 }
  0x1b   : > { %s790_s18 = scalar_lea.hbm %s899_s0, %s456_s5  ;;  %s792_s23 = scalar_lea.sflag [#allocation5], %s103_s26 }
  0x1c   : > { %s550_s24 = scalar_lea.hbm %s790_s18, 512  ;;  %p552_p2 = pneg %p783_p0 }
  0x1d   : > { %p551_p1 = scmp.ne.s32.totalorder %s790_s18, %s550_s24  ;;  %s555_s29 = scalar_lea.hbm %s899_s0, 2048 }
  0x1e   : > { %p556_p5 = scmp.lt.u32.totalorder %s790_s18, %s899_s0  ;;  %p557_p6 = scmp.lt.u32.totalorder %s555_s29, %s550_s24 }
  0x1f   : > { %p553_p3 = pnand %p552_p2, %p551_p1  ;;  %p559_p10 = scmp.lt.u32.totalorder %s550_s24, %s790_s18 }
  0x20   : > { %p558_p7 = por %p557_p6, %p556_p5 }
  0x21   : > { %p554_p4 = pneg %p553_p3 }
  0x22   : > { %p560_p11 = por %p559_p10, %p558_p7 }
  0x24   : > { %p561_p13 = pnand %p560_p11, %p554_p4 }
  0x26   : > { %564 = shalt.err (!%p561_p13)
}
  0x27   : > { %s565_s26 = scalar_lea.vmem %s779_s3, 512  ;;  %s680_s4 = smov [#allocation4]  }
  0x28   : > { %p566_p1 = scmp.ne.s32.totalorder %s779_s3, %s565_s26  ;;  %s570_s5 = sshll.u32 %s680_s4, 4  ;;  %s571_s5 = int_to_ptr.vmem [resolvable:$false] %s570_s5 }
  0x29   : > { %s572_s15 = scalar_lea.vmem %s571_s5, 1024  ;;  %p573_p9 = scmp.lt.s32.totalorder %s779_s3, %s571_s5 }
  0x2a   : > { %p568_p3 = pnand %p566_p1, %p552_p2  ;;  %p574_p5 = scmp.lt.s32.totalorder %s572_s15, %s565_s26 }
  0x2c   : > { %p569_p12 = pneg %p568_p3  ;;  %p575_p6 = por %p574_p5, %p573_p9 }
  0x2e   : > { %p576_p7 = pnand %p575_p6, %p569_p12 }
  0x30   : > { %579 = shalt.err (!%p576_p7)
}
  0x31   : > { %s681_s19 = smov 128   ;;  %s682_s24 = smov 8  }
  0x32   : > { %474 = dma.hbm_to_vmem [thread:$0]  (!%p783_p0), %s790_s18, 512, %s779_s3, %s792_s23, %s681_s19, %s681_s19, %s682_s24  }
  0x33   : > { %p457_p2 = scmp.ge.s32.totalorder %s678_s13, 1  ;;  %p125_p4 = scmp.lt.s32.totalorder %s678_s13, 5 }
  0x35   : > { %p126_p10 = pnand %p457_p2, %p125_p4 }
  0x36   : > { %s823_s20 = sand.u32 (!%p126_p10), 1, %s654_s7  }
  0x37   : > { %129 = sbr.rel (%p126_p10) target bundleno = 374 (0x176), region = 24  ;;  %s458_s28 = sshll.u32 (!%p126_p10), %s823_s20, 5 }
  0x38   : > { %s132_s29 = scalar_lea.sflag (!%p126_p10), [#allocation5], %s823_s20  ;;  %s135_s30 = scalar_lea.vmem (!%p126_p10), [#allocation4], %s458_s28 }
  0x3e   : > { %641 = dma.done.wait (%p758_p8), %s132_s29, 512  }
  0x3f   : > { %643 = vsyncadd (%p758_p8), %s132_s29, 4294966784  ;;  %vm156_vm0 = vcmask 122880   ;;  %v683_v0 = vmov 0.0   ;;  %vm170_vm1 = vcmask 130048   ;;  %v166_v1 = vld [vmem:[%s135_s30] sm:$0xff]  ;;  %v167_v2 = vld [vmem:[%s135_s30 + $0x8] sm:$0xff] }
  0x40   : > { %157 = vst.msk [vmem:[#allocation2 + $0x7] sm:$0x1] %vm156_vm0, %v683_v0  ;;  %158 = vst.msk [vmem:[#allocation2 + $0x27] sm:$0x1] %vm156_vm0, %v683_v0  ;;  %v168_v3 = vld [vmem:[%s135_s30 + $0x10] sm:$0xff]  ;;  %v169_v4 = vld [vmem:[%s135_s30 + $0x18] sm:$0xff] }
  0x41   : > { %171 = vst.msk [vmem:[#allocation2 + $0x8] sm:$0xff] %vm170_vm1, %v166_v1  ;;  %172 = vst.msk [vmem:[#allocation2 + $0x10] sm:$0xff] %vm170_vm1, %v167_v2  ;;  %vm161_vm2 = vcmask 57344   ;;  %vm255_vm3 = vcmask 64512   ;;  %s459_s21 = sshll.u32 %s823_s20, 4  ;;  %s461_s3 = sshll.u32 %s662_s9, 1 }
  0x42   : > { %173 = vst.msk [vmem:[#allocation2 + $0x28] sm:$0xff] %vm170_vm1, %v168_v3  ;;  %174 = vst.msk [vmem:[#allocation2 + $0x30] sm:$0xff] %vm170_vm1, %v169_v4  ;;  %s462_s14 = sshll.u32 %s666_s10, 2  ;;  %s153_s23 = scalar_lea.vmem [#allocation7], %s459_s21 }
  0x43   : > { %162 = vst.msk [vmem:[#allocation3 + $0x7] sm:$0x1] %vm161_vm2, %v683_v0  ;;  %163 = vst.msk [vmem:[#allocation3 + $0x27] sm:$0x1] %vm161_vm2, %v683_v0  ;;  %s355_s18 = sadd.s32 %s462_s14, %s461_s3  ;;  %s358_s2 = sshll.u32 %s153_s23, 4  ;;  %s839_s2 = int_to_ptr.vmem [resolvable:$true] %s358_s2 }
  0x44   : > { %s463_s26 = sshll.u32 %s355_s18, 7  ;;  %s343_s9 = scalar_lea.sflag [#allocation6], %s823_s20 }
  0x45   : > { %s844_s15 = scalar_lea.hbm %s900_s1, %s463_s26  ;;  %s580_s10 = scalar_lea.vmem %s839_s2, 256 }
  0x46   : > { %p581_p8 = scmp.ne.s32.totalorder %s839_s2, %s580_s10  ;;  %p907_p9 = scmp.ne.s32.totalorder %s904_s22, 0 }
  0x47   : > { %s684_s19 = smov [#allocation7]  }
  0x48   : > { %v176_v5 = vld [vmem:[#allocation2 + $0x7] ss:$2 sm:$0xff]  ;;  %v180_v6 = vld [vmem:[#allocation2 + $0x8] ss:$2 sm:$0xff]  ;;  %p582_p12 = pnand %p581_p8, %p907_p9  ;;  %s584_s24 = sshll.u32 %s684_s19, 4  ;;  %s585_s24 = int_to_ptr.vmem [resolvable:$false] %s584_s24 }
  0x49   : > { %v186_v7 = vld [vmem:[#allocation2 + $0x9] ss:$2 sm:$0xff]  ;;  %v183_v8 = vmax.f32 %v176_v5, %v180_v6  ;;  %v182_v10 = vld [vmem:[#allocation2 + $0x28] ss:$2 sm:$0xff]  ;;  %s586_s28 = scalar_lea.vmem %s585_s24, 512  ;;  %p587_p11 = scmp.lt.s32.totalorder %s839_s2, %s585_s24 }
  0x4a   : > { %v178_v9 = vld [vmem:[#allocation2 + $0x27] ss:$2 sm:$0xff]  ;;  %p583_p0 = pneg %p582_p12  ;;  %p588_p13 = scmp.lt.s32.totalorder %s586_s28, %s580_s10 }
  0x4b   : > { %v184_v11 = vmax.f32 %v178_v9, %v182_v10  ;;  %v189_v12 = vmax.f32 %v183_v8, %v186_v7  ;;  %v188_v13 = vld [vmem:[#allocation2 + $0x29] ss:$2 sm:$0xff] }
  0x4c   : > { %p589_p1 = por %p588_p13, %p587_p11 }
  0x4d   : > { %191 = vxpose.xlu0.b32.start.end [1/1] (short) (narrow) %v189_v12, 16  ;;  %v190_v14 = vmax.f32 %v184_v11, %v188_v13 }
  0x4e   : > { %p590_p3 = pnand %p589_p1, %p583_p0 }
  0x52   : > { %223 = vxpose.xlu0.b32.start.end [1/1] (short) (narrow) %v190_v14, 16 }
  0xcd   : > { %v207_v15 = vpop.trf.xlu0 }
  0xce   : > { %256 = vst.msk [vmem:[#allocation3 + $0x8] sm:$0xff] %vm255_vm3, %v207_v15 }
  0xd1   : > { %v208_v16 = vpop.trf.xlu0 }
  0xd2   : > { %257 = vst.msk [vmem:[#allocation3 + $0x10] sm:$0xff] %vm255_vm3, %v208_v16 }
  0xd5   : > { %v239_v17 = vpop.trf.xlu0 }
  0xd6   : > { %258 = vst.msk [vmem:[#allocation3 + $0x28] sm:$0xff] %vm255_vm3, %v239_v17 }
  0xd9   : > { %v240_v18 = vpop.trf.xlu0  ;;  %v261_v19 = vld [vmem:[#allocation3 + $0x7] ss:$2 sm:$0xff]  ;;  %v265_v20 = vld [vmem:[#allocation3 + $0x8] ss:$2 sm:$0xff] }
  0xda   : > { %259 = vst.msk [vmem:[#allocation3 + $0x30] sm:$0xff] %vm255_vm3, %v240_v18  ;;  %v268_v21 = vmax.f32 %v261_v19, %v265_v20  ;;  %v271_v22 = vld [vmem:[#allocation3 + $0x9] ss:$2 sm:$0xff] }
  0xdc   : > { %v274_v23 = vmax.f32 %v268_v21, %v271_v22 }
  0xde   : > { %276 = vxpose.xlu1.b32.start.end [1/1] (short) (narrow) %v274_v23, 8 }
  0xe1   : > { %v263_v24 = vld [vmem:[#allocation3 + $0x27] ss:$2 sm:$0xff]  ;;  %v267_v25 = vld [vmem:[#allocation3 + $0x28] ss:$2 sm:$0xff] }
  0xe2   : > { %v269_v26 = vmax.f32 %v263_v24, %v267_v25  ;;  %v273_v27 = vld [vmem:[#allocation3 + $0x29] ss:$2 sm:$0xff] }
  0xe4   : > { %v275_v28 = vmax.f32 %v269_v26, %v273_v27 }
  0xe6   : > { %308 = vxpose.xlu1.b32.start.end [1/1] (short) (narrow) %v275_v28, 8 }
 0x15e   : > { %v292_v29 = vpop.trf.xlu1 }
 0x15f   : > { %340 = vst.msk [vmem:[%s153_s23] sm:$0xff] %vm255_vm3, %v292_v29 }
 0x166   : > { %v324_v30 = vpop.trf.xlu1 }
 0x167   : > { %341 = vst.msk [vmem:[%s153_s23 + $0x8] sm:$0xff] %vm255_vm3, %v324_v30 }
 0x168   : > { %593 = shalt.err (!%p590_p3)
}
 0x169   : > { %s594_s29 = scalar_lea.hbm %s844_s15, 256  ;;  %s598_s3 = scalar_lea.hbm %s900_s1, 1024 }
 0x16a   : > { %p595_p5 = scmp.ne.s32.totalorder %s844_s15, %s594_s29  ;;  %p599_p2 = scmp.lt.u32.totalorder %s844_s15, %s900_s1 }
 0x16b   : > { %p600_p4 = scmp.lt.u32.totalorder %s598_s3, %s594_s29  ;;  %p602_p8 = scmp.lt.u32.totalorder %s594_s29, %s844_s15 }
 0x16c   : > { %p596_p6 = pnand %p595_p5, %p907_p9 }
 0x16d   : > { %p601_p10 = por %p600_p4, %p599_p2 }
 0x16e   : > { %p597_p7 = pneg %p596_p6 }
 0x16f   : > { %p603_p12 = por %p602_p8, %p601_p10 }
 0x171   : > { %p604_p0 = pnand %p603_p12, %p597_p7 }
 0x173   : > { %607 = shalt.err (!%p604_p0)
}
 0x174   : > { %s685_s23 = smov 128   ;;  %s686_s26 = smov 8  }
 0x175   : > { %469 = dma.vmem_to_hbm [thread:$0]  (%p907_p9), %s839_s2, 256, %s844_s15, %s343_s9, %s685_s23, %s685_s23, %s686_s26  }
 0x176 PF: > { %p480_p11 = scmp.ge.s32.totalorder %s678_s13, 2  ;;  %s373_s4 = sand.u32 1, %s650_s6  }
 0x177   : > { %p908_p13 = scmp.ne.s32.totalorder %s905_s25, 0  ;;  %s374_s5 = scalar_lea.sflag [#allocation6], %s373_s4 }
 0x179   : > { %p476_p1 = pnand %p480_p11, %p908_p13 }
 0x17b   : > { %645 = dma.done.wait (!%p476_p1), %s374_s5, 256  }
 0x17c   : > { %647 = vsyncadd (!%p476_p1), %s374_s5, 4294967040  ;;  %s17_s13 = sadd.s32 1, %s678_s13   ;;  %s909_s6 = smov %s654_s7 }
 0x17d   : > { %p14_p3 = scmp.ge.s32.totalorder %s17_s13, 6   ;;  %s910_s7 = smov %s658_s8 }
 0x17e   : > { %s911_s8 = smov %s775_s27  ;;  %s912_s9 = smov %s670_s11 }
 0x17f   : > { %s913_s10 = smov %s674_s12  ;;  %s914_s11 = smov %s917_s16 }
 0x180   : > { %s915_s12 = smov %s921_s17  ;;  %16 = sbr.rel (!%p14_p3) target bundleno = 7 (0x7), region = 81 }
 0x187   :  { %379 = vsyncpa [#allocation5], 1 }
 0x188   :  { %381 = vsyncpa [#allocation5 + $0x1], 1 }
 0x189   :  { %382 = vsyncpa [#allocation6], 1 }
 0x18a   :  { %384 = vsyncpa [#allocation6 + $0x1], 1 }

</bundles_post_ra>
